<compile_context>
chip_gen: v7x
topology: tpu7x:2x2x1
jax: 0.10.0
libtpu: 0.0.40
codegen_flags: <defaults>
</compile_context>

<pallas_src>
import functools

import jax
import jax.numpy as jnp
from jax.experimental import pallas as pl
from jax.experimental.pallas import tpu as pltpu

VOCAB = 64     # vocab_size
EMB = 16       # embedding_dim
CTX = 2        # context_size (classic trigram model)
HID = 128      # linear1 output features (hard-coded 128 in the module)

LANE = 128            # TPU lane width
TILE_B_MAX = 1024     # max batch rows per grid step (sweepable 512-2048)
NEG_BIG = jnp.float32(-1e30)   # pad value for masked vocab lanes (keep f32)


def _round_up(n, m):
    return ((n + m - 1) // m) * m


VOCAB_PAD = _round_up(VOCAB, LANE)   # lane-dense logits / output width (=128)


def ngram_kernel(x_ref, w1_ref, b1_ref, w2_ref, b2_ref, out_ref):
    # x_ref: (TILE_B, CTX*EMB) bf16 -- pre-gathered, flattened context embeddings.
    # Single fused matmul over the whole context: bf16 x bf16 -> f32 on the MXU.
    h = jnp.dot(x_ref[...], w1_ref[...], preferred_element_type=jnp.float32)
    h = jnp.maximum(h + b1_ref[...], 0.0)                       # (TILE_B, HID) f32, ReLU

    # Second matmul on the native bf16 MXU path (cast the activation, not W2).
    # Padded vocab lanes of b2 are pre-biased to -1e30 (W2 pad columns are 0),
    # so no per-step iota/where mask is needed.
    logits = jnp.dot(h.astype(jnp.bfloat16), w2_ref[...],
                     preferred_element_type=jnp.float32) + b2_ref[...]  # (TILE_B, VOCAB_PAD)

    # Numerically stable log_softmax along the vocab dim (all f32).
    m = jnp.max(logits, axis=1, keepdims=True)
    s = logits - m
    out_ref[...] = s - jnp.log(jnp.sum(jnp.exp(s), axis=1, keepdims=True))


@functools.partial(jax.jit, static_argnames=("tile_b_max",))
def ngram_forward(ids, emb, w1_t, b1, w2_t, b2, *, tile_b_max=TILE_B_MAX):
    """Batched NGram LM forward.

    ids  : (B, CTX) int32 (or (CTX,) for a single example, like the module)
    emb  : (VOCAB, EMB) bf16    -- nn.Embedding.weight
    w1_t : (CTX*EMB, HID) bf16  -- linear1.weight.T
    b1   : (1, HID) f32
    w2_t : (HID, VOCAB) bf16    -- linear2.weight.T
    b2   : (1, VOCAB) f32
    Returns (B, VOCAB) float32 log-probs (one row per example).
    """
    if ids.ndim == 1:
        ids = ids[None, :]
    B = ids.shape[0]

    # Adaptive tile: don't pad tiny batches up to a huge tile, but give large
    # batches 512-1024-row tiles so per-step overhead is amortized.
    tile_b = min(tile_b_max, _round_up(B, 8))
    b_pad = _round_up(B, tile_b)

    # Embedding gather + flatten in XLA, off the kernel's critical path.
    x = emb[ids].reshape(B, CTX * EMB)                           # (B, CTX*EMB) bf16
    if b_pad != B:
        x = jnp.pad(x, ((0, b_pad - B), (0, 0)))

    # Pad vocab dim to a lane-dense multiple of 128.  W2 pad columns are 0;
    # b2 pad lanes are -1e30 so padded logits are -1e30 with no in-kernel mask.
    w2_p = jnp.pad(w2_t, ((0, 0), (0, VOCAB_PAD - VOCAB)))
    b2_p = jnp.pad(b2, ((0, 0), (0, VOCAB_PAD - VOCAB)), constant_values=NEG_BIG)

    out = pl.pallas_call(
        ngram_kernel,
        out_shape=jax.ShapeDtypeStruct((b_pad, VOCAB_PAD), jnp.float32),
        grid=(b_pad // tile_b,),
        in_specs=[
            pl.BlockSpec((tile_b, CTX * EMB), lambda i: (i, 0)),    # activations (per step)
            pl.BlockSpec((CTX * EMB, HID), lambda i: (0, 0)),       # W1 (resident)
            pl.BlockSpec((1, HID), lambda i: (0, 0)),               # b1 (resident)
            pl.BlockSpec((HID, VOCAB_PAD), lambda i: (0, 0)),       # W2 padded (resident)
            pl.BlockSpec((1, VOCAB_PAD), lambda i: (0, 0)),         # b2 padded (resident)
        ],
        out_specs=pl.BlockSpec((tile_b, VOCAB_PAD), lambda i: (i, 0)),
        compiler_params=pltpu.CompilerParams(
            dimension_semantics=("parallel",)),   # batch steps shardable across TCs
    )(x, w1_t, b1, w2_p, b2_p)

    return out[:B, :VOCAB]


def reference_forward(ids, emb, w1_t, b1, w2_t, b2):
    """Pure-JAX reference matching PyTorch semantics (mirrors kernel dtype casts)."""
    if ids.ndim == 1:
        ids = ids[None, :]
    x = emb.astype(jnp.float32)[ids].reshape(ids.shape[0], -1)   # (B, CTX*EMB)
    h = jnp.maximum(x @ w1_t.astype(jnp.float32) + b1, 0.0)      # (B, HID)
    # Mirror the kernel's bf16 cast of the activation feeding the second matmul.
    h = h.astype(jnp.bfloat16).astype(jnp.float32)
    logits = h @ w2_t.astype(jnp.float32) + b2                   # (B, VOCAB)
    return jax.nn.log_softmax(logits, axis=-1)


if __name__ == "__main__":
    key = jax.random.PRNGKey(0)
    k_emb, k_w1, k_b1, k_w2, k_b2, k_ids = jax.random.split(key, 6)

    # Deterministic synthetic parameters (shapes from __init__); MXU weights in bf16.
    emb = jax.random.normal(k_emb, (VOCAB, EMB), jnp.float32).astype(jnp.bfloat16)
    w1_t = (jax.random.normal(k_w1, (CTX * EMB, HID), jnp.float32) * 0.1).astype(jnp.bfloat16)
    b1 = jax.random.normal(k_b1, (1, HID), jnp.float32) * 0.1
    w2_t = (jax.random.normal(k_w2, (HID, VOCAB), jnp.float32) * 0.1).astype(jnp.bfloat16)
    b2 = jax.random.normal(k_b2, (1, VOCAB), jnp.float32) * 0.1

    # --- Batched path: B=256 contexts, single adaptive grid step (tile_b=256). ---
    B = 256
    ids = jax.random.randint(k_ids, (B, CTX), 0, VOCAB, dtype=jnp.int32)

    log_probs = jax.block_until_ready(ngram_forward(ids, emb, w1_t, b1, w2_t, b2))
    ref = reference_forward(ids, emb, w1_t, b1, w2_t, b2)

    assert log_probs.shape == (B, VOCAB)
    max_err = float(jnp.max(jnp.abs(log_probs - ref)))
    assert jnp.allclose(log_probs, ref, atol=5e-3, rtol=5e-3), f"mismatch vs reference: {max_err}"
    assert jnp.allclose(jnp.sum(jnp.exp(log_probs), axis=1), 1.0, atol=1e-3)

    # --- Same batch with a forced small tile to exercise the multi-step grid. ---
    log_probs_t = jax.block_until_ready(
        ngram_forward(ids, emb, w1_t, b1, w2_t, b2, tile_b_max=128))
    assert jnp.allclose(log_probs_t, ref, atol=5e-3, rtol=5e-3)

    # --- Single-example path, matching the module's (CTX,) -> (1, VOCAB) usage. ---
    ids1 = ids[0]                                                 # (CTX,)
    lp1 = jax.block_until_ready(ngram_forward(ids1, emb, w1_t, b1, w2_t, b2))
    assert lp1.shape == (1, VOCAB)
    assert jnp.allclose(lp1, ref[:1], atol=5e-3, rtol=5e-3)

    print("KERNEL_OK")
</pallas_src>

<mosaic_0001>
module attributes {stable_mosaic.version = 11 : i64} {
  func.func @ngram_kernel(%arg0: i32, %arg1: memref<256x32xbf16, #tpu.memory_space<vmem>>, %arg2: memref<32x128xbf16, #tpu.memory_space<vmem>>, %arg3: memref<1x128xf32, #tpu.memory_space<vmem>>, %arg4: memref<128x128xbf16, #tpu.memory_space<vmem>>, %arg5: memref<1x128xf32, #tpu.memory_space<vmem>>, %arg6: memref<256x128xf32, #tpu.memory_space<vmem>>) attributes {dimension_semantics = [#tpu.dimension_semantics<parallel>], iteration_bounds = array<i64: 1>, scalar_prefetch = 0 : i64, scratch_operands = 0 : i64, tpu.core_type = #tpu.core_type<tc>, window_params = [{transform_indices = @transform_0, window_bounds = array<i64: 256, 32>}, {pipeline_mode = #tpu.pipeline_mode<synchronous>, transform_indices = @transform_1, window_bounds = array<i64: 32, 128>}, {pipeline_mode = #tpu.pipeline_mode<synchronous>, transform_indices = @transform_2, window_bounds = array<i64: 1, 128>}, {pipeline_mode = #tpu.pipeline_mode<synchronous>, transform_indices = @transform_3, window_bounds = array<i64: 128, 128>}, {pipeline_mode = #tpu.pipeline_mode<synchronous>, transform_indices = @transform_4, window_bounds = array<i64: 1, 128>}, {transform_indices = @transform_5, window_bounds = array<i64: 256, 128>}]} {
    %c0 = arith.constant 0 : index
    %c0_0 = arith.constant 0 : index
    %0 = vector.load %arg1[%c0, %c0_0] : memref<256x32xbf16, #tpu.memory_space<vmem>>, vector<256x32xbf16>
    %c0_1 = arith.constant 0 : index
    %c0_2 = arith.constant 0 : index
    %1 = vector.load %arg2[%c0_1, %c0_2] : memref<32x128xbf16, #tpu.memory_space<vmem>>, vector<32x128xbf16>
    %cst = arith.constant dense<0.000000e+00> : vector<256x128xf32>
    %2 = tpu.matmul %0, %1, %cst {dimension_numbers = #tpu.dot_dimension_numbers<[1], [0], [0], [1], [0, 0, 1, 1], [], []>} : vector<256x32xbf16>, vector<32x128xbf16>, vector<256x128xf32> -> vector<256x128xf32>
    %c0_3 = arith.constant 0 : index
    %c0_4 = arith.constant 0 : index
    %3 = vector.load %arg3[%c0_3, %c0_4] : memref<1x128xf32, #tpu.memory_space<vmem>>, vector<1x128xf32>
    %4 = vector.broadcast %3 : vector<1x128xf32> to vector<256x128xf32>
    %5 = arith.addf %2, %4 : vector<256x128xf32>
    %cst_5 = arith.constant 0.000000e+00 : f32
    %6 = vector.broadcast %cst_5 : f32 to vector<256x128xf32>
    %7 = arith.maximumf %5, %6 : vector<256x128xf32>
    %8 = arith.truncf %7 : vector<256x128xf32> to vector<256x128xbf16>
    %c0_6 = arith.constant 0 : index
    %c0_7 = arith.constant 0 : index
    %9 = vector.load %arg4[%c0_6, %c0_7] : memref<128x128xbf16, #tpu.memory_space<vmem>>, vector<128x128xbf16>
    %cst_8 = arith.constant dense<0.000000e+00> : vector<256x128xf32>
    %10 = tpu.matmul %8, %9, %cst_8 {dimension_numbers = #tpu.dot_dimension_numbers<[1], [0], [0], [1], [0, 0, 1, 1], [], []>} : vector<256x128xbf16>, vector<128x128xbf16>, vector<256x128xf32> -> vector<256x128xf32>
    %c0_9 = arith.constant 0 : index
    %c0_10 = arith.constant 0 : index
    %11 = vector.load %arg5[%c0_9, %c0_10] : memref<1x128xf32, #tpu.memory_space<vmem>>, vector<1x128xf32>
    %12 = vector.broadcast %11 : vector<1x128xf32> to vector<256x128xf32>
    %13 = arith.addf %10, %12 : vector<256x128xf32>
    %cst_11 = arith.constant dense<0xFF800000> : vector<256xf32>
    %14 = vector.multi_reduction <maximumf>, %13, %cst_11 [1] : vector<256x128xf32> to vector<256xf32>
    %15 = vector.shape_cast %14 : vector<256xf32> to vector<256x1xf32>
    %16 = vector.broadcast %15 : vector<256x1xf32> to vector<256x128xf32>
    %17 = arith.subf %13, %16 : vector<256x128xf32>
    %18 = math.exp %17 : vector<256x128xf32>
    %cst_12 = arith.constant dense<0.000000e+00> : vector<256xf32>
    %19 = vector.multi_reduction <add>, %18, %cst_12 [1] : vector<256x128xf32> to vector<256xf32>
    %20 = vector.shape_cast %19 : vector<256xf32> to vector<256x1xf32>
    %21 = math.log %20 : vector<256x1xf32>
    %22 = vector.broadcast %21 : vector<256x1xf32> to vector<256x128xf32>
    %23 = arith.subf %17, %22 : vector<256x128xf32>
    %c0_13 = arith.constant 0 : index
    %c0_14 = arith.constant 0 : index
    %24 = vector.load %arg6[%c0_13, %c0_14] : memref<256x128xf32, #tpu.memory_space<vmem>>, vector<256x128xf32>
    tpu.vector_store %arg6[%c0_13, %c0_14], %23 {strides = array<i32>} : memref<256x128xf32, #tpu.memory_space<vmem>>, vector<256x128xf32>,
    return
  }
  func.func @transform_0(%arg0: i32) -> (i32, i32) {
    %c0_i32 = arith.constant 0 : i32
    %c0_i32_0 = arith.constant 0 : i32
    return %arg0, %c0_i32 : i32, i32
  }
  func.func @transform_1(%arg0: i32) -> (i32, i32) {
    %c0_i32 = arith.constant 0 : i32
    %c0_i32_0 = arith.constant 0 : i32
    %c0_i32_1 = arith.constant 0 : i32
    return %c0_i32, %c0_i32_0 : i32, i32
  }
  func.func @transform_2(%arg0: i32) -> (i32, i32) {
    %c0_i32 = arith.constant 0 : i32
    %c0_i32_0 = arith.constant 0 : i32
    %c0_i32_1 = arith.constant 0 : i32
    return %c0_i32, %c0_i32_0 : i32, i32
  }
  func.func @transform_3(%arg0: i32) -> (i32, i32) {
    %c0_i32 = arith.constant 0 : i32
    %c0_i32_0 = arith.constant 0 : i32
    %c0_i32_1 = arith.constant 0 : i32
    return %c0_i32, %c0_i32_0 : i32, i32
  }
  func.func @transform_4(%arg0: i32) -> (i32, i32) {
    %c0_i32 = arith.constant 0 : i32
    %c0_i32_0 = arith.constant 0 : i32
    %c0_i32_1 = arith.constant 0 : i32
    return %c0_i32, %c0_i32_0 : i32, i32
  }
  func.func @transform_5(%arg0: i32) -> (i32, i32) {
    %c0_i32 = arith.constant 0 : i32
    %c0_i32_0 = arith.constant 0 : i32
    return %arg0, %c0_i32 : i32, i32
  }
}

</mosaic_0001>

<bundles_post_ra>
// kernel: ngram_forward.1
= control target key start
LH: loop header
LB: loop body
LE: loop exit
PB: predicated region body
PF: predicated region fallthrough
CT: control target
= control target key end

     0   :  { %vm156_vm0 = vcmask 261120   ;;  %s1892_s1 = inlined_call_operand.vmem [shape: bf16[32,128], index: 1, kind: input, shape index: {}]   ;;  %s1893_s0 = inlined_call_operand.vmem [shape: bf16[256,32], index: 0, kind: input, shape index: {}]   ;;  %s1894_s3 = inlined_call_operand.vmem [shape: bf16[128,128], index: 3, kind: input, shape index: {}]   ;;  %s1895_s2 = inlined_call_operand.vmem [shape: f32[1,128], index: 2, kind: input, shape index: {}]   ;;  %s1896_s4 = inlined_call_operand.vmem [shape: f32[1,128], index: 4, kind: input, shape index: {}]   ;;  %s1897_s5 = inlined_call_operand.vmem [shape: f32[256,128], index: 5, kind: output, shape index: {}]  }
   0x1   :  { %v1188_v0 = vld [vmem:[%s1892_s1] sm:$0xff]   ;;  %v1189_v1 = vld [vmem:[%s1892_s1 + $0x8] sm:$0xff]   ;;  %v1192_v4 = vld [vmem:[%s1893_s0 + $0x10] sm:$0xff]  }
   0x2   :  { %1088 = vmatprep.subr.bf16.mxu0 %v1188_v0  ;;  %v1190_v2 = vld [vmem:[%s1893_s0] sm:$0xff]   ;;  %v1191_v3 = vld [vmem:[%s1893_s0 + $0x8] sm:$0xff]   ;;  %v1193_v5 = vld [vmem:[%s1893_s0 + $0x18] sm:$0xff]  }
   0x3   :  { %1089 = vmatpush3.bf16.msra.mxu0 %v1188_v0  ;;  %1092 = vmatprep.mubr.msk.bf16.mxu0 %vm156_vm0, %v1190_v2  ;;  %v1194_v6 = vld [vmem:[%s1893_s0 + $0x20] sm:$0xff]   ;;  %v1207_v8 = vld [vmem:[%s1894_s3 + $0x8] sm:$0xff]   ;;  %v1208_v10 = vld [vmem:[%s1894_s3 + $0x10] sm:$0xff]  }
   0x4   :  { %1090 = vmatprep.subr.bf16.mxu0 %v1189_v1  ;;  %v1206_v7 = vld [vmem:[%s1894_s3] sm:$0xff]   ;;  %v1195_v9 = vld [vmem:[%s1893_s0 + $0x28] sm:$0xff]   ;;  %v1196_v11 = vld [vmem:[%s1893_s0 + $0x30] sm:$0xff]  }
   0x5   :  { %1172 = vmatprep.subr.bf16.mxu1 %v1206_v7  ;;  %v1209_v12 = vld [vmem:[%s1894_s3 + $0x18] sm:$0xff]   ;;  %v1210_v14 = vld [vmem:[%s1894_s3 + $0x20] sm:$0xff]   ;;  %v1211_v16 = vld [vmem:[%s1894_s3 + $0x28] sm:$0xff]  }
   0x6   :  { %1180 = vmatpush3.bf16.msra.mxu1 %v1206_v7  ;;  %v1197_v13 = vld [vmem:[%s1893_s0 + $0x38] sm:$0xff]   ;;  %v1198_v15 = vld [vmem:[%s1893_s0 + $0x40] sm:$0xff]   ;;  %v1199_v17 = vld [vmem:[%s1893_s0 + $0x48] sm:$0xff]  }
   0x7   :  { %1091 = vmatpush3.bf16.msra.mxu0 %v1189_v1  ;;  %1173 = vmatprep.subr.bf16.mxu1 %v1207_v8  ;;  %v1212_v18 = vld [vmem:[%s1894_s3 + $0x30] sm:$0xff]   ;;  %v1201_v20 = vld [vmem:[%s1893_s0 + $0x58] sm:$0xff]   ;;  %v1202_v21 = vld [vmem:[%s1893_s0 + $0x60] sm:$0xff]  }
   0x8   :  { %1124 = vmatprep.subr.bf16.mxu0 %v1206_v7  ;;  %v1200_v19 = vld [vmem:[%s1893_s0 + $0x50] sm:$0xff]   ;;  %v1203_v22 = vld [vmem:[%s1893_s0 + $0x68] sm:$0xff]   ;;  %v1205_v24 = vld [vmem:[%s1893_s0 + $0x78] sm:$0xff]  }
   0x9   :  { %v1204_v23 = vld [vmem:[%s1893_s0 + $0x70] sm:$0xff]   ;;  %v1213_v25 = vld [vmem:[%s1894_s3 + $0x38] sm:$0xff]   ;;  %v1469_v26 = vld [vmem:[%s1895_s2] ss:$0 sm:$0xff] }
   0xa   :  { %1093 = vmatmul.mubr.msk.bf16.vlgmr.msra.gmra.mrb[0].mxu0 %vm156_vm0, %v1191_v3  ;;  %1181 = vmatpush3.bf16.msra.mxu1 %v1207_v8 }
   0xb   :  { %1096 = vmatprep.mubr.msk.bf16.mxu0 %vm156_vm0, %v1192_v4  ;;  %1125 = vmatpush3.bf16.msra.mxu0 %v1206_v7 }
   0xc   :  { %1126 = vmatprep.subr.bf16.mxu0 %v1207_v8  ;;  %1174 = vmatprep.subr.bf16.mxu1 %v1208_v10 }
   0xe   :  { %1182 = vmatpush3.bf16.msra.mxu1 %v1208_v10 }
   0xf   :  { %1127 = vmatpush3.bf16.msra.mxu0 %v1207_v8  ;;  %1175 = vmatprep.subr.bf16.mxu1 %v1209_v12 }
  0x10   :  { %1128 = vmatprep.subr.bf16.mxu0 %v1208_v10 }
  0x12   :  { %1097 = vmatmul.mubr.msk.bf16.gmra.mrb[4].mxu0 %vm156_vm0, %v1193_v5  ;;  %1183 = vmatpush3.bf16.msra.mxu1 %v1209_v12 }
  0x13   :  { %1100 = vmatprep.mubr.msk.bf16.mxu0 %vm156_vm0, %v1194_v6  ;;  %1129 = vmatpush3.bf16.msra.mxu0 %v1208_v10 }
  0x14   :  { %1130 = vmatprep.subr.bf16.mxu0 %v1209_v12  ;;  %1176 = vmatprep.subr.bf16.mxu1 %v1210_v14 }
  0x16   :  { %1184 = vmatpush3.bf16.msra.mxu1 %v1210_v14 }
  0x17   :  { %1131 = vmatpush3.bf16.msra.mxu0 %v1209_v12  ;;  %1177 = vmatprep.subr.bf16.mxu1 %v1211_v16 }
  0x18   :  { %1132 = vmatprep.subr.bf16.mxu0 %v1210_v14 }
  0x1a   :  { %1101 = vmatmul.mubr.msk.bf16.gmra.mrb[8].mxu0 %vm156_vm0, %v1195_v9  ;;  %1185 = vmatpush3.bf16.msra.mxu1 %v1211_v16 }
  0x1b   :  { %1104 = vmatprep.mubr.msk.bf16.mxu0 %vm156_vm0, %v1196_v11  ;;  %1133 = vmatpush3.bf16.msra.mxu0 %v1210_v14 }
  0x1c   :  { %1134 = vmatprep.subr.bf16.mxu0 %v1211_v16  ;;  %1178 = vmatprep.subr.bf16.mxu1 %v1212_v18 }
  0x1e   :  { %1186 = vmatpush3.bf16.msra.mxu1 %v1212_v18 }
  0x1f   :  { %1135 = vmatpush3.bf16.msra.mxu0 %v1211_v16  ;;  %1179 = vmatprep.subr.bf16.mxu1 %v1213_v25 }
  0x20   :  { %1136 = vmatprep.subr.bf16.mxu0 %v1212_v18 }
  0x22   :  { %1105 = vmatmul.mubr.msk.bf16.gmra.mrb[12].mxu0 %vm156_vm0, %v1197_v13  ;;  %1187 = vmatpush3.bf16.msra.mxu1 %v1213_v25 }
  0x23   :  { %1108 = vmatprep.mubr.msk.bf16.mxu0 %vm156_vm0, %v1198_v15  ;;  %1137 = vmatpush3.bf16.msra.mxu0 %v1212_v18 }
  0x24   :  { %1138 = vmatprep.subr.bf16.mxu0 %v1213_v25 }
  0x27   :  { %1139 = vmatpush3.bf16.msra.mxu0 %v1213_v25 }
  0x2a   :  { %1109 = vmatmul.mubr.msk.bf16.gmra.mrb[16].mxu0 %vm156_vm0, %v1199_v17 }
  0x2b   :  { %1112 = vmatprep.mubr.msk.bf16.mxu0 %vm156_vm0, %v1200_v19 }
  0x32   :  { %1113 = vmatmul.mubr.msk.bf16.gmra.mrb[20].mxu0 %vm156_vm0, %v1201_v20 }
  0x33   :  { %1116 = vmatprep.mubr.msk.bf16.mxu0 %vm156_vm0, %v1202_v21 }
  0x3a   :  { %1117 = vmatmul.mubr.msk.bf16.gmra.mrb[24].mxu0 %vm156_vm0, %v1203_v22 }
  0x3b   :  { %1120 = vmatprep.mubr.msk.bf16.mxu0 %vm156_vm0, %v1204_v23 }
  0x42   :  { %1121 = vmatmul.mubr.msk.bf16.gmra.mrb[28].mxu0 %vm156_vm0, %v1205_v24 }
  0xdd   :  { %v1094_v27 = vpop.f32.mrb[0].mxu0 }
  0xde   :  { %v248_v28 = vadd.f32 %v1094_v27, %v1469_v26  ;;  %v239_v29 = vpop.f32.mrb[1].mxu0 }
  0xdf   :  { %v240_v30 = vadd.f32 %v1469_v26, %v239_v29  ;;  %v1095_v31 = vpop.f32.mrb[2].mxu0 }
  0xe0   :  { %v251_v32 = vadd.f32 %v1095_v31, %v1469_v26  ;;  %v242_v33 = vpop.f32.mrb[3].mxu0  ;;  %v368_v35 = vmax.f32 %v248_v28, 0.0 }
  0xe1   :  { %v243_v34 = vadd.f32 %v1469_v26, %v242_v33  ;;  %v366_v37 = vmax.f32 %v240_v30, 0.0 }
  0xe2   :  { %v369_v36 = vmax.f32 %v251_v32, 0.0 }
  0xe3   :  { %v367_v38 = vmax.f32 %v243_v34, 0.0 }
  0xe4   :  { %v399_v39 = vpack.c.bf16 %v369_v36, %v368_v35 }
  0xe5   :  { %v398_v40 = vpack.c.bf16 %v367_v38, %v366_v37  ;;  %v1098_v41 = vpop.f32.mrb[4].mxu0 }
  0xe6   :  { %v264_v42 = vadd.f32 %v1098_v41, %v1469_v26  ;;  %v255_v43 = vpop.f32.mrb[5].mxu0 }
  0xe7   :  { %v256_v44 = vadd.f32 %v1469_v26, %v255_v43  ;;  %v1099_v45 = vpop.f32.mrb[6].mxu0  ;;  %1140 = vmatprep.mubr.bf16.mxu0 %v398_v40 }
  0xe8   :  { %v372_v46 = vmax.f32 %v264_v42, 0.0  ;;  %v267_v47 = vadd.f32 %v1099_v45, %v1469_v26  ;;  %v258_v48 = vpop.f32.mrb[7].mxu0  ;;  %1141 = vmatmul.mubr.bf16.vlgmr.msra.gmra.mrb[32].mxu0 %v399_v39 }
  0xe9   :  { %v259_v49 = vadd.f32 %v1469_v26, %v258_v48  ;;  %v370_v51 = vmax.f32 %v256_v44, 0.0 }
  0xea   :  { %v373_v50 = vmax.f32 %v267_v47, 0.0 }
  0xeb   :  { %v371_v52 = vmax.f32 %v259_v49, 0.0 }
  0xec   :  { %v401_v53 = vpack.c.bf16 %v373_v50, %v372_v46 }
  0xed   :  { %v1102_v54 = vpop.f32.mrb[8].mxu0  ;;  %v400_v55 = vpack.c.bf16 %v371_v52, %v370_v51 }
  0xee   :  { %v280_v56 = vadd.f32 %v1102_v54, %v1469_v26  ;;  %v271_v57 = vpop.f32.mrb[9].mxu0 }
  0xef   :  { %v272_v58 = vadd.f32 %v1469_v26, %v271_v57  ;;  %v1103_v59 = vpop.f32.mrb[10].mxu0  ;;  %1144 = vmatprep.mubr.bf16.mxu1 %v400_v55 }
  0xf0   :  { %v376_v60 = vmax.f32 %v280_v56, 0.0  ;;  %v283_v61 = vadd.f32 %v1103_v59, %v1469_v26  ;;  %v274_v62 = vpop.f32.mrb[11].mxu0  ;;  %1145 = vmatmul.mubr.bf16.vlgmr.msra.gmra.mrb[0].mxu1 %v401_v53 }
  0xf1   :  { %v275_v63 = vadd.f32 %v1469_v26, %v274_v62  ;;  %v374_v1 = vmax.f32 %v272_v58, 0.0 }
  0xf2   :  { %v377_v0 = vmax.f32 %v283_v61, 0.0 }
  0xf3   :  { %v375_v2 = vmax.f32 %v275_v63, 0.0 }
  0xf4   :  { %v403_v3 = vpack.c.bf16 %v377_v0, %v376_v60 }
  0xf5   :  { %v402_v4 = vpack.c.bf16 %v375_v2, %v374_v1  ;;  %v1106_v5 = vpop.f32.mrb[12].mxu0 }
  0xf6   :  { %v296_v6 = vadd.f32 %v1106_v5, %v1469_v26  ;;  %v287_v7 = vpop.f32.mrb[13].mxu0 }
  0xf7   :  { %v288_v8 = vadd.f32 %v1469_v26, %v287_v7  ;;  %v1107_v9 = vpop.f32.mrb[14].mxu0  ;;  %1148 = vmatprep.mubr.bf16.mxu1 %v402_v4 }
  0xf8   :  { %v380_v10 = vmax.f32 %v296_v6, 0.0  ;;  %v299_v11 = vadd.f32 %v1107_v9, %v1469_v26  ;;  %v290_v12 = vpop.f32.mrb[15].mxu0  ;;  %1149 = vmatmul.mubr.bf16.gmra.mrb[4].mxu1 %v403_v3 }
  0xf9   :  { %v291_v13 = vadd.f32 %v1469_v26, %v290_v12  ;;  %v378_v15 = vmax.f32 %v288_v8, 0.0  ;;  %v1506_v12 = vld [vmem:[%s1896_s4] ss:$0 sm:$0xff] }
  0xfa   :  { %v381_v14 = vmax.f32 %v299_v11, 0.0 }
  0xfb   :  { %v379_v16 = vmax.f32 %v291_v13, 0.0 }
  0xfc   :  { %v405_v17 = vpack.c.bf16 %v381_v14, %v380_v10 }
  0xfd   :  { %v404_v18 = vpack.c.bf16 %v379_v16, %v378_v15  ;;  %v1110_v19 = vpop.f32.mrb[16].mxu0 }
  0xfe   :  { %v312_v20 = vadd.f32 %v1110_v19, %v1469_v26  ;;  %v303_v21 = vpop.f32.mrb[17].mxu0 }
  0xff   :  { %v304_v22 = vadd.f32 %v1469_v26, %v303_v21  ;;  %v1111_v23 = vpop.f32.mrb[18].mxu0  ;;  %1152 = vmatprep.mubr.bf16.mxu1 %v404_v18 }
 0x100   :  { %v384_v24 = vmax.f32 %v312_v20, 0.0  ;;  %v315_v25 = vadd.f32 %v1111_v23, %v1469_v26  ;;  %v306_v27 = vpop.f32.mrb[19].mxu0  ;;  %1153 = vmatmul.mubr.bf16.gmra.mrb[8].mxu1 %v405_v17 }
 0x101   :  { %v307_v28 = vadd.f32 %v1469_v26, %v306_v27  ;;  %v382_v30 = vmax.f32 %v304_v22, 0.0 }
 0x102   :  { %v385_v29 = vmax.f32 %v315_v25, 0.0 }
 0x103   :  { %v383_v31 = vmax.f32 %v307_v28, 0.0 }
 0x104   :  { %v407_v32 = vpack.c.bf16 %v385_v29, %v384_v24 }
 0x105   :  { %v406_v33 = vpack.c.bf16 %v383_v31, %v382_v30  ;;  %v1114_v34 = vpop.f32.mrb[20].mxu0 }
 0x106   :  { %v328_v35 = vadd.f32 %v1114_v34, %v1469_v26  ;;  %v319_v36 = vpop.f32.mrb[21].mxu0 }
 0x107   :  { %v320_v37 = vadd.f32 %v1469_v26, %v319_v36  ;;  %v1115_v38 = vpop.f32.mrb[22].mxu0  ;;  %1156 = vmatprep.mubr.bf16.mxu1 %v406_v33 }
 0x108   :  { %v388_v39 = vmax.f32 %v328_v35, 0.0  ;;  %v331_v40 = vadd.f32 %v1115_v38, %v1469_v26  ;;  %v322_v41 = vpop.f32.mrb[23].mxu0  ;;  %1157 = vmatmul.mubr.bf16.gmra.mrb[12].mxu1 %v407_v32 }
 0x109   :  { %v323_v42 = vadd.f32 %v1469_v26, %v322_v41  ;;  %v386_v44 = vmax.f32 %v320_v37, 0.0 }
 0x10a   :  { %v389_v43 = vmax.f32 %v331_v40, 0.0 }
 0x10b   :  { %v387_v45 = vmax.f32 %v323_v42, 0.0 }
 0x10c   :  { %v409_v46 = vpack.c.bf16 %v389_v43, %v388_v39 }
 0x10d   :  { %v408_v47 = vpack.c.bf16 %v387_v45, %v386_v44  ;;  %v1118_v48 = vpop.f32.mrb[24].mxu0 }
 0x10e   :  { %v344_v49 = vadd.f32 %v1118_v48, %v1469_v26  ;;  %v335_v50 = vpop.f32.mrb[25].mxu0 }
 0x10f   :  { %v336_v51 = vadd.f32 %v1469_v26, %v335_v50  ;;  %v1119_v52 = vpop.f32.mrb[26].mxu0  ;;  %1160 = vmatprep.mubr.bf16.mxu1 %v408_v47 }
 0x110   :  { %v392_v53 = vmax.f32 %v344_v49, 0.0  ;;  %v347_v54 = vadd.f32 %v1119_v52, %v1469_v26  ;;  %v338_v55 = vpop.f32.mrb[27].mxu0  ;;  %1161 = vmatmul.mubr.bf16.gmra.mrb[16].mxu1 %v409_v46 }
 0x111   :  { %v339_v56 = vadd.f32 %v1469_v26, %v338_v55  ;;  %v390_v58 = vmax.f32 %v336_v51, 0.0 }
 0x112   :  { %v393_v57 = vmax.f32 %v347_v54, 0.0 }
 0x113   :  { %v391_v59 = vmax.f32 %v339_v56, 0.0 }
 0x114   :  { %v411_v60 = vpack.c.bf16 %v393_v57, %v392_v53 }
 0x115   :  { %v410_v61 = vpack.c.bf16 %v391_v59, %v390_v58  ;;  %v1122_v62 = vpop.f32.mrb[28].mxu0 }
 0x116   :  { %v360_v63 = vadd.f32 %v1122_v62, %v1469_v26  ;;  %v351_v0 = vpop.f32.mrb[29].mxu0 }
 0x117   :  { %v352_v1 = vadd.f32 %v1469_v26, %v351_v0  ;;  %v1123_v2 = vpop.f32.mrb[30].mxu0  ;;  %1164 = vmatprep.mubr.bf16.mxu1 %v410_v61 }
 0x118   :  { %v396_v3 = vmax.f32 %v360_v63, 0.0  ;;  %v363_v4 = vadd.f32 %v1123_v2, %v1469_v26  ;;  %v354_v5 = vpop.f32.mrb[31].mxu0  ;;  %1165 = vmatmul.mubr.bf16.gmra.mrb[20].mxu1 %v411_v60 }
 0x119   :  { %v355_v6 = vadd.f32 %v1469_v26, %v354_v5  ;;  %v394_v8 = vmax.f32 %v352_v1, 0.0 }
 0x11a   :  { %v397_v7 = vmax.f32 %v363_v4, 0.0 }
 0x11b   :  { %v395_v9 = vmax.f32 %v355_v6, 0.0 }
 0x11c   :  { %v413_v10 = vpack.c.bf16 %v397_v7, %v396_v3 }
 0x11d   :  { %v412_v11 = vpack.c.bf16 %v395_v9, %v394_v8 }
 0x11f   :  { %1168 = vmatprep.mubr.bf16.mxu1 %v412_v11 }
 0x120   :  { %1169 = vmatmul.mubr.bf16.gmra.mrb[24].mxu1 %v413_v10 }
 0x1bb   :  { %v1142_v13 = vpop.f32.mrb[32].mxu0 }
 0x1bc   :  { %v1509_v14 = vadd.f32 %v1142_v13, %v1506_v12  ;;  %v519_v15 = vpop.f32.mrb[33].mxu0 }
 0x1bd   :  { %v1512_v16 = vadd.f32 %v1506_v12, %v519_v15  ;;  %v1143_v26 = vpop.f32.mrb[34].mxu0 }
 0x1be   :  { %650 = vmax.xlane.f32.xlu1 %v1509_v14  ;;  %v522_v17 = vpop.f32.mrb[35].mxu0  ;;  %v1517_v18 = vadd.f32 %v1143_v26, %v1506_v12 }
 0x1bf   :  { %646 = vmax.xlane.f32.xlu0 %v1512_v16  ;;  %v1520_v19 = vadd.f32 %v1506_v12, %v522_v17 }
 0x1c2   :  { %652 = vmax.xlane.f32.xlu1 %v1517_v18 }
 0x1c3   :  { %v1146_v20 = vpop.f32.mrb[0].mxu1  ;;  %648 = vmax.xlane.f32.xlu0 %v1520_v19 }
 0x1c4   :  { %v1525_v21 = vadd.f32 %v1146_v20, %v1506_v12  ;;  %v535_v22 = vpop.f32.mrb[1].mxu1 }
 0x1c5   :  { %v1147_v23 = vpop.f32.mrb[2].mxu1  ;;  %v1533_v27 = vadd.f32 %v1506_v12, %v535_v22 }
 0x1c6   :  { %v1528_v24 = vadd.f32 %v1147_v23, %v1506_v12  ;;  %v538_v25 = vpop.f32.mrb[3].mxu1 }
 0x1c7   :  { %658 = vmax.xlane.f32.xlu0 %v1525_v21  ;;  %v1536_v28 = vadd.f32 %v1506_v12, %v538_v25 }
 0x1c8   :  { %660 = vmax.xlane.f32.xlu1 %v1528_v24 }
 0x1cb   :  { %v1150_v29 = vpop.f32.mrb[4].mxu1  ;;  %654 = vmax.xlane.f32.xlu0 %v1533_v27 }
 0x1cc   :  { %v1540_v30 = vadd.f32 %v1150_v29, %v1506_v12  ;;  %v551_v31 = vpop.f32.mrb[5].mxu1  ;;  %656 = vmax.xlane.f32.xlu1 %v1536_v28 }
 0x1cd   :  { %v1151_v32 = vpop.f32.mrb[6].mxu1  ;;  %v1549_v35 = vadd.f32 %v1506_v12, %v551_v31 }
 0x1ce   :  { %v1544_v33 = vadd.f32 %v1151_v32, %v1506_v12  ;;  %v554_v34 = vpop.f32.mrb[7].mxu1 }
 0x1cf   :  { %666 = vmax.xlane.f32.xlu0 %v1540_v30  ;;  %v1552_v36 = vadd.f32 %v1506_v12, %v554_v34 }
 0x1d0   :  { %668 = vmax.xlane.f32.xlu1 %v1544_v33 }
 0x1d3   :  { %v1154_v37 = vpop.f32.mrb[8].mxu1  ;;  %662 = vmax.xlane.f32.xlu0 %v1549_v35 }
 0x1d4   :  { %v1556_v38 = vadd.f32 %v1154_v37, %v1506_v12  ;;  %v567_v39 = vpop.f32.mrb[9].mxu1  ;;  %664 = vmax.xlane.f32.xlu1 %v1552_v36 }
 0x1d5   :  { %v1155_v40 = vpop.f32.mrb[10].mxu1  ;;  %v1565_v43 = vadd.f32 %v1506_v12, %v567_v39 }
 0x1d6   :  { %v1560_v41 = vadd.f32 %v1155_v40, %v1506_v12  ;;  %v570_v42 = vpop.f32.mrb[11].mxu1 }
 0x1d7   :  { %674 = vmax.xlane.f32.xlu0 %v1556_v38  ;;  %v1568_v44 = vadd.f32 %v1506_v12, %v570_v42 }
 0x1d8   :  { %676 = vmax.xlane.f32.xlu1 %v1560_v41 }
 0x1db   :  { %v1158_v45 = vpop.f32.mrb[12].mxu1  ;;  %670 = vmax.xlane.f32.xlu0 %v1565_v43 }
 0x1dc   :  { %v1572_v46 = vadd.f32 %v1158_v45, %v1506_v12  ;;  %v583_v47 = vpop.f32.mrb[13].mxu1  ;;  %672 = vmax.xlane.f32.xlu1 %v1568_v44 }
 0x1dd   :  { %v1159_v48 = vpop.f32.mrb[14].mxu1  ;;  %v1581_v51 = vadd.f32 %v1506_v12, %v583_v47 }
 0x1de   :  { %v1576_v49 = vadd.f32 %v1159_v48, %v1506_v12  ;;  %v586_v50 = vpop.f32.mrb[15].mxu1 }
 0x1df   :  { %682 = vmax.xlane.f32.xlu0 %v1572_v46  ;;  %v1584_v52 = vadd.f32 %v1506_v12, %v586_v50 }
 0x1e0   :  { %684 = vmax.xlane.f32.xlu1 %v1576_v49 }
 0x1e3   :  { %v1162_v53 = vpop.f32.mrb[16].mxu1  ;;  %678 = vmax.xlane.f32.xlu0 %v1581_v51 }
 0x1e4   :  { %v1588_v54 = vadd.f32 %v1162_v53, %v1506_v12  ;;  %v599_v55 = vpop.f32.mrb[17].mxu1  ;;  %680 = vmax.xlane.f32.xlu1 %v1584_v52 }
 0x1e5   :  { %v1163_v56 = vpop.f32.mrb[18].mxu1  ;;  %v1597_v59 = vadd.f32 %v1506_v12, %v599_v55 }
 0x1e6   :  { %v1592_v57 = vadd.f32 %v1163_v56, %v1506_v12  ;;  %v602_v58 = vpop.f32.mrb[19].mxu1 }
 0x1e7   :  { %690 = vmax.xlane.f32.xlu0 %v1588_v54  ;;  %v1600_v60 = vadd.f32 %v1506_v12, %v602_v58 }
 0x1e8   :  { %692 = vmax.xlane.f32.xlu1 %v1592_v57 }
 0x1eb   :  { %v1166_v61 = vpop.f32.mrb[20].mxu1  ;;  %686 = vmax.xlane.f32.xlu0 %v1597_v59 }
 0x1ec   :  { %v1604_v62 = vadd.f32 %v1166_v61, %v1506_v12  ;;  %v615_v63 = vpop.f32.mrb[21].mxu1  ;;  %688 = vmax.xlane.f32.xlu1 %v1600_v60 }
 0x1ed   :  { %v1167_v0 = vpop.f32.mrb[22].mxu1  ;;  %v1613_v3 = vadd.f32 %v1506_v12, %v615_v63 }
 0x1ee   :  { %v1608_v1 = vadd.f32 %v1167_v0, %v1506_v12  ;;  %v618_v2 = vpop.f32.mrb[23].mxu1 }
 0x1ef   :  { %698 = vmax.xlane.f32.xlu0 %v1604_v62  ;;  %v1616_v4 = vadd.f32 %v1506_v12, %v618_v2 }
 0x1f0   :  { %700 = vmax.xlane.f32.xlu1 %v1608_v1 }
 0x1f3   :  { %v1170_v5 = vpop.f32.mrb[24].mxu1  ;;  %694 = vmax.xlane.f32.xlu0 %v1613_v3 }
 0x1f4   :  { %v631_v6 = vpop.f32.mrb[25].mxu1  ;;  %696 = vmax.xlane.f32.xlu1 %v1616_v4  ;;  %v1628_v11 = vadd.f32 %v1170_v5, %v1506_v12 }
 0x1f5   :  { %v1621_v7 = vadd.f32 %v1506_v12, %v631_v6  ;;  %v1171_v8 = vpop.f32.mrb[26].mxu1 }
 0x1f6   :  { %v634_v9 = vpop.f32.mrb[27].mxu1  ;;  %v1632_v13 = vadd.f32 %v1171_v8, %v1506_v12 }
 0x1f7   :  { %v1624_v10 = vadd.f32 %v1506_v12, %v634_v9  ;;  %702 = vmax.xlane.f32.xlu0 %v1621_v7 }
 0x1f9   :  { %704 = vmax.xlane.f32.xlu1 %v1624_v10 }
 0x1fb   :  { %706 = vmax.xlane.f32.xlu0 %v1628_v11 }
 0x1fd   :  { %708 = vmax.xlane.f32.xlu1 %v1632_v13 }
 0x24b   :  { %v651_v15 = vpop.xlane.xlu1 %650 }
 0x24c   :  { %v1637_v26 = vsub.f32 %v1509_v14, %v651_v15  ;;  %v647_v17 = vpop.xlane.xlu0 %646 }
 0x24d   :  { %v1640_v20 = vsub.f32 %v1512_v16, %v647_v17 }
 0x24e   :  { %v746_v22 = vmul.f32 1.442695, %v1637_v26 }
 0x24f   :  { %v742_v23 = vmul.f32 1.442695, %v1640_v20  ;;  %v653_v25 = vpop.xlane.xlu1 %652 }
 0x250   :  { %1214 = vpow2.f32 %v746_v22  ;;  %v1645_v12 = vsub.f32 %v1517_v18, %v653_v25  ;;  %v649_v29 = vpop.xlane.xlu0 %648 }
 0x251   :  { %v1648_v31 = vsub.f32 %v1520_v19, %v649_v29  ;;  %1216 = vpow2.f32 %v742_v23 }
 0x252   :  { %v748_v14 = vmul.f32 1.442695, %v1645_v12 }
 0x253   :  { %v744_v16 = vmul.f32 1.442695, %v1648_v31 }
 0x254   :  { %1218 = vpow2.f32 %v748_v14  ;;  %v659_v32 = vpop.xlane.xlu0 %658 }
 0x255   :  { %v1653_v34 = vsub.f32 %v1525_v21, %v659_v32  ;;  %v661_v37 = vpop.xlane.xlu1 %660  ;;  %1220 = vpow2.f32 %v744_v16 }
 0x256   :  { %v1656_v39 = vsub.f32 %v1528_v24, %v661_v37 }
 0x257   :  { %v754_v18 = vmul.f32 1.442695, %v1653_v34 }
 0x258   :  { %v756_v19 = vmul.f32 1.442695, %v1656_v39  ;;  %v655_v40 = vpop.xlane.xlu0 %654 }
 0x259   :  { %1222 = vpow2.f32 %v754_v18  ;;  %v1661_v42 = vsub.f32 %v1533_v27, %v655_v40  ;;  %v657_v45 = vpop.xlane.xlu1 %656 }
 0x25a   :  { %v1215_v47 = vpop.eup %1214  ;;  %v1664_v48 = vsub.f32 %v1536_v28, %v657_v45  ;;  %1224 = vpow2.f32 %v756_v19 }
 0x25b   :  { %v750_v21 = vmul.f32 1.442695, %v1661_v42  ;;  %810 = vadd.xlane.f32.xlu0 %v1215_v47  ;;  %v1217_v53 = vpop.eup %1216 }
 0x25c   :  { %v752_v24 = vmul.f32 1.442695, %v1664_v48  ;;  %v667_v50 = vpop.xlane.xlu0 %666 }
 0x25d   :  { %1226 = vpow2.f32 %v750_v21  ;;  %v1669_v55 = vsub.f32 %v1540_v30, %v667_v50  ;;  %v669_v56 = vpop.xlane.xlu1 %668 }
 0x25e   :  { %v1219_v27 = vpop.eup %1218  ;;  %v1672_v58 = vsub.f32 %v1544_v33, %v669_v56  ;;  %1228 = vpow2.f32 %v752_v24 }
 0x25f   :  { %v762_v28 = vmul.f32 1.442695, %v1669_v55  ;;  %812 = vadd.xlane.f32.xlu1 %v1219_v27  ;;  %806 = vadd.xlane.f32.xlu0 %v1217_v53  ;;  %v1221_v30 = vpop.eup %1220 }
 0x260   :  { %v764_v61 = vmul.f32 1.442695, %v1672_v58  ;;  %v663_v63 = vpop.xlane.xlu0 %662 }
 0x261   :  { %1230 = vpow2.f32 %v762_v28  ;;  %v1677_v0 = vsub.f32 %v1549_v35, %v663_v63  ;;  %v665_v2 = vpop.xlane.xlu1 %664 }
 0x262   :  { %v1680_v5 = vsub.f32 %v1552_v36, %v665_v2  ;;  %1232 = vpow2.f32 %v764_v61 }
 0x263   :  { %v1223_v6 = vpop.eup %1222  ;;  %v758_v33 = vmul.f32 1.442695, %v1677_v0  ;;  %808 = vadd.xlane.f32.xlu1 %v1221_v30 }
 0x264   :  { %v760_v8 = vmul.f32 1.442695, %v1680_v5  ;;  %818 = vadd.xlane.f32.xlu0 %v1223_v6  ;;  %v675_v9 = vpop.xlane.xlu0 %674  ;;  %v1225_v17 = vpop.eup %1224 }
 0x265   :  { %1234 = vpow2.f32 %v758_v33  ;;  %v1685_v15 = vsub.f32 %v1556_v38, %v675_v9  ;;  %v677_v35 = vpop.xlane.xlu1 %676 }
 0x266   :  { %v1688_v22 = vsub.f32 %v1560_v41, %v677_v35  ;;  %1236 = vpow2.f32 %v760_v8 }
 0x267   :  { %v1227_v36 = vpop.eup %1226  ;;  %v770_v23 = vmul.f32 1.442695, %v1685_v15  ;;  %820 = vadd.xlane.f32.xlu1 %v1225_v17 }
 0x268   :  { %v772_v25 = vmul.f32 1.442695, %v1688_v22  ;;  %814 = vadd.xlane.f32.xlu0 %v1227_v36  ;;  %v671_v29 = vpop.xlane.xlu0 %670  ;;  %v1229_v16 = vpop.eup %1228 }
 0x269   :  { %1238 = vpow2.f32 %v770_v23  ;;  %v1693_v14 = vsub.f32 %v1565_v43, %v671_v29  ;;  %v673_v38 = vpop.xlane.xlu1 %672 }
 0x26a   :  { %v1696_v32 = vsub.f32 %v1568_v44, %v673_v38  ;;  %1240 = vpow2.f32 %v772_v25 }
 0x26b   :  { %v1231_v41 = vpop.eup %1230  ;;  %v766_v37 = vmul.f32 1.442695, %v1693_v14  ;;  %816 = vadd.xlane.f32.xlu1 %v1229_v16 }
 0x26c   :  { %v768_v18 = vmul.f32 1.442695, %v1696_v32  ;;  %826 = vadd.xlane.f32.xlu0 %v1231_v41  ;;  %v683_v19 = vpop.xlane.xlu0 %682  ;;  %v1233_v45 = vpop.eup %1232 }
 0x26d   :  { %1242 = vpow2.f32 %v766_v37  ;;  %v1701_v40 = vsub.f32 %v1572_v46, %v683_v19  ;;  %v685_v43 = vpop.xlane.xlu1 %684 }
 0x26e   :  { %v1704_v47 = vsub.f32 %v1576_v49, %v685_v43  ;;  %1244 = vpow2.f32 %v768_v18 }
 0x26f   :  { %v1235_v44 = vpop.eup %1234  ;;  %v778_v21 = vmul.f32 1.442695, %v1701_v40  ;;  %828 = vadd.xlane.f32.xlu1 %v1233_v45 }
 0x270   :  { %v780_v24 = vmul.f32 1.442695, %v1704_v47  ;;  %822 = vadd.xlane.f32.xlu0 %v1235_v44  ;;  %v679_v50 = vpop.xlane.xlu0 %678  ;;  %v1237_v56 = vpop.eup %1236 }
 0x271   :  { %1246 = vpow2.f32 %v778_v21  ;;  %v1709_v53 = vsub.f32 %v1581_v51, %v679_v50  ;;  %v681_v46 = vpop.xlane.xlu1 %680 }
 0x272   :  { %v1712_v27 = vsub.f32 %v1584_v52, %v681_v46  ;;  %1248 = vpow2.f32 %v780_v24 }
 0x273   :  { %v1239_v49 = vpop.eup %1238  ;;  %v774_v28 = vmul.f32 1.442695, %v1709_v53  ;;  %824 = vadd.xlane.f32.xlu1 %v1237_v56 }
 0x274   :  { %v776_v61 = vmul.f32 1.442695, %v1712_v27  ;;  %834 = vadd.xlane.f32.xlu0 %v1239_v49  ;;  %v691_v63 = vpop.xlane.xlu0 %690  ;;  %v1241_v30 = vpop.eup %1240 }
 0x275   :  { %1250 = vpow2.f32 %v774_v28  ;;  %v1717_v2 = vsub.f32 %v1588_v54, %v691_v63  ;;  %v693_v51 = vpop.xlane.xlu1 %692 }
 0x276   :  { %v1720_v6 = vsub.f32 %v1592_v57, %v693_v51  ;;  %1252 = vpow2.f32 %v776_v61 }
 0x277   :  { %v1243_v52 = vpop.eup %1242  ;;  %v786_v33 = vmul.f32 1.442695, %v1717_v2  ;;  %836 = vadd.xlane.f32.xlu1 %v1241_v30 }
 0x278   :  { %v788_v8 = vmul.f32 1.442695, %v1720_v6  ;;  %830 = vadd.xlane.f32.xlu0 %v1243_v52  ;;  %v687_v9 = vpop.xlane.xlu0 %686  ;;  %v1245_v17 = vpop.eup %1244 }
 0x279   :  { %1254 = vpow2.f32 %v786_v33  ;;  %v1725_v35 = vsub.f32 %v1597_v59, %v687_v9  ;;  %v689_v54 = vpop.xlane.xlu1 %688 }
 0x27a   :  { %v1728_v36 = vsub.f32 %v1600_v60, %v689_v54  ;;  %1256 = vpow2.f32 %v788_v8 }
 0x27b   :  { %v1247_v57 = vpop.eup %1246  ;;  %v782_v23 = vmul.f32 1.442695, %v1725_v35  ;;  %832 = vadd.xlane.f32.xlu1 %v1245_v17 }
 0x27c   :  { %v784_v25 = vmul.f32 1.442695, %v1728_v36  ;;  %842 = vadd.xlane.f32.xlu0 %v1247_v57  ;;  %v699_v29 = vpop.xlane.xlu0 %698  ;;  %v1249_v16 = vpop.eup %1248 }
 0x27d   :  { %1258 = vpow2.f32 %v782_v23  ;;  %v1733_v38 = vsub.f32 %v1604_v62, %v699_v29  ;;  %v701_v59 = vpop.xlane.xlu1 %700 }
 0x27e   :  { %v1736_v41 = vsub.f32 %v1608_v1, %v701_v59  ;;  %1260 = vpow2.f32 %v784_v25 }
 0x27f   :  { %v1251_v60 = vpop.eup %1250  ;;  %v794_v37 = vmul.f32 1.442695, %v1733_v38  ;;  %844 = vadd.xlane.f32.xlu1 %v1249_v16 }
 0x280   :  { %v796_v18 = vmul.f32 1.442695, %v1736_v41  ;;  %838 = vadd.xlane.f32.xlu0 %v1251_v60  ;;  %v695_v19 = vpop.xlane.xlu0 %694  ;;  %v1253_v45 = vpop.eup %1252 }
 0x281   :  { %1262 = vpow2.f32 %v794_v37  ;;  %v1741_v43 = vsub.f32 %v1613_v3, %v695_v19  ;;  %v697_v62 = vpop.xlane.xlu1 %696 }
 0x282   :  { %v1744_v44 = vsub.f32 %v1616_v4, %v697_v62  ;;  %1264 = vpow2.f32 %v796_v18 }
 0x283   :  { %v1255_v1 = vpop.eup %1254  ;;  %v790_v21 = vmul.f32 1.442695, %v1741_v43  ;;  %840 = vadd.xlane.f32.xlu1 %v1253_v45 }
 0x284   :  { %v792_v24 = vmul.f32 1.442695, %v1744_v44  ;;  %850 = vadd.xlane.f32.xlu0 %v1255_v1  ;;  %v703_v50 = vpop.xlane.xlu0 %702  ;;  %v1257_v3 = vpop.eup %1256 }
 0x285   :  { %1266 = vpow2.f32 %v790_v21  ;;  %v1749_v46 = vsub.f32 %v1621_v7, %v703_v50 }
 0x286   :  { %v705_v56 = vpop.xlane.xlu1 %704  ;;  %1268 = vpow2.f32 %v792_v24 }
 0x287   :  { %v1259_v49 = vpop.eup %1258  ;;  %v798_v28 = vmul.f32 1.442695, %v1749_v46  ;;  %v1753_v4 = vsub.f32 %v1624_v10, %v705_v56  ;;  %852 = vadd.xlane.f32.xlu1 %v1257_v3 }
 0x288   :  { %846 = vadd.xlane.f32.xlu0 %v1259_v49  ;;  %v707_v61 = vpop.xlane.xlu0 %706  ;;  %v1261_v7 = vpop.eup %1260 }
 0x289   :  { %1270 = vpow2.f32 %v798_v28  ;;  %v800_v63 = vmul.f32 1.442695, %v1753_v4  ;;  %v1757_v51 = vsub.f32 %v1628_v11, %v707_v61 }
 0x28a   :  { %v709_v30 = vpop.xlane.xlu1 %708 }
 0x28b   :  { %v1263_v52 = vpop.eup %1262  ;;  %1272 = vpow2.f32 %v800_v63  ;;  %v802_v33 = vmul.f32 1.442695, %v1757_v51  ;;  %v1761_v8 = vsub.f32 %v1632_v13, %v709_v30  ;;  %848 = vadd.xlane.f32.xlu1 %v1261_v7 }
 0x28c   :  { %858 = vadd.xlane.f32.xlu0 %v1263_v52  ;;  %v1265_v9 = vpop.eup %1264 }
 0x28d   :  { %1274 = vpow2.f32 %v802_v33  ;;  %v804_v10 = vmul.f32 1.442695, %v1761_v8 }
 0x28f   :  { %v1267_v54 = vpop.eup %1266  ;;  %1276 = vpow2.f32 %v804_v10  ;;  %860 = vadd.xlane.f32.xlu1 %v1265_v9 }
 0x290   :  { %854 = vadd.xlane.f32.xlu0 %v1267_v54  ;;  %v1269_v11 = vpop.eup %1268 }
 0x293   :  { %v1271_v17 = vpop.eup %1270  ;;  %856 = vadd.xlane.f32.xlu1 %v1269_v11 }
 0x294   :  { %862 = vadd.xlane.f32.xlu0 %v1271_v17 }
 0x295   :  { %v1273_v57 = vpop.eup %1272 }
 0x297   :  { %v1275_v23 = vpop.eup %1274  ;;  %864 = vadd.xlane.f32.xlu1 %v1273_v57 }
 0x298   :  { %866 = vadd.xlane.f32.xlu0 %v1275_v23 }
 0x299   :  { %v1277_v13 = vpop.eup %1276 }
 0x29b   :  { %868 = vadd.xlane.f32.xlu1 %v1277_v13 }
 0x2e8   :  { %v811_v25 = vpop.xlane.xlu0 %810 }
 0x2e9   :  { %1278 = vlog2.f32 %v811_v25 }
 0x2ec   :  { %v813_v29 = vpop.xlane.xlu1 %812  ;;  %v807_v59 = vpop.xlane.xlu0 %806 }
 0x2ed   :  { %1280 = vlog2.f32 %v813_v29 }
 0x2ee   :  { %1282 = vlog2.f32 %v807_v59 }
 0x2f0   :  { %v809_v16 = vpop.xlane.xlu1 %808 }
 0x2f1   :  { %1284 = vlog2.f32 %v809_v16  ;;  %v819_v60 = vpop.xlane.xlu0 %818 }
 0x2f2   :  { %1286 = vlog2.f32 %v819_v60 }
 0x2f3   :  { %v1279_v37 = vpop.eup %1278 }
 0x2f4   :  { %v875_v18 = vmul.f32 0.6931472, %v1279_v37  ;;  %v821_v19 = vpop.xlane.xlu1 %820 }
 0x2f5   :  { %1288 = vlog2.f32 %v821_v19  ;;  %v815_v62 = vpop.xlane.xlu0 %814 }
 0x2f6   :  { %v936_v45 = vsub.f32 %v1637_v26, %v875_v18  ;;  %1290 = vlog2.f32 %v815_v62 }
 0x2f7   :  { %v1281_v1 = vpop.eup %1280 }
 0x2f8   :  { %v1283_v21 = vpop.eup %1282  ;;  %968 = vst [vmem:[%s1897_s5 + $0x10] sm:$0xff] %v936_v45  ;;  %v877_v24 = vmul.f32 0.6931472, %v1281_v1  ;;  %v817_v50 = vpop.xlane.xlu1 %816 }
 0x2f9   :  { %v871_v3 = vmul.f32 0.6931472, %v1283_v21  ;;  %1292 = vlog2.f32 %v817_v50  ;;  %v827_v56 = vpop.xlane.xlu0 %826 }
 0x2fa   :  { %v937_v49 = vsub.f32 %v1645_v12, %v877_v24  ;;  %1294 = vlog2.f32 %v827_v56 }
 0x2fb   :  { %v1285_v28 = vpop.eup %1284  ;;  %v934_v61 = vsub.f32 %v1640_v20, %v871_v3 }
 0x2fc   :  { %v1287_v63 = vpop.eup %1286  ;;  %969 = vst [vmem:[%s1897_s5 + $0x18] sm:$0xff] %v937_v49  ;;  %v873_v26 = vmul.f32 0.6931472, %v1285_v28  ;;  %v829_v7 = vpop.xlane.xlu1 %828 }
 0x2fd   :  { %966 = vst [vmem:[%s1897_s5] sm:$0xff] %v934_v61  ;;  %v883_v30 = vmul.f32 0.6931472, %v1287_v63  ;;  %1296 = vlog2.f32 %v829_v7  ;;  %v823_v52 = vpop.xlane.xlu0 %822 }
 0x2fe   :  { %v935_v12 = vsub.f32 %v1648_v31, %v873_v26  ;;  %1298 = vlog2.f32 %v823_v52 }
 0x2ff   :  { %v1289_v33 = vpop.eup %1288  ;;  %v940_v20 = vsub.f32 %v1653_v34, %v883_v30 }
 0x300   :  { %v1291_v10 = vpop.eup %1290  ;;  %967 = vst [vmem:[%s1897_s5 + $0x8] sm:$0xff] %v935_v12  ;;  %v885_v9 = vmul.f32 0.6931472, %v1289_v33  ;;  %v825_v54 = vpop.xlane.xlu1 %824 }
 0x301   :  { %972 = vst [vmem:[%s1897_s5 + $0x30] sm:$0xff] %v940_v20  ;;  %v879_v11 = vmul.f32 0.6931472, %v1291_v10  ;;  %1300 = vlog2.f32 %v825_v54  ;;  %v835_v17 = vpop.xlane.xlu0 %834 }
 0x302   :  { %v941_v31 = vsub.f32 %v1656_v39, %v885_v9  ;;  %1302 = vlog2.f32 %v835_v17 }
 0x303   :  { %v1293_v57 = vpop.eup %1292  ;;  %v938_v34 = vsub.f32 %v1661_v42, %v879_v11 }
 0x304   :  { %v1295_v23 = vpop.eup %1294  ;;  %973 = vst [vmem:[%s1897_s5 + $0x38] sm:$0xff] %v941_v31  ;;  %v881_v13 = vmul.f32 0.6931472, %v1293_v57  ;;  %v837_v25 = vpop.xlane.xlu1 %836 }
 0x305   :  { %970 = vst [vmem:[%s1897_s5 + $0x20] sm:$0xff] %v938_v34  ;;  %v891_v29 = vmul.f32 0.6931472, %v1295_v23  ;;  %1304 = vlog2.f32 %v837_v25  ;;  %v831_v59 = vpop.xlane.xlu0 %830 }
 0x306   :  { %v939_v39 = vsub.f32 %v1664_v48, %v881_v13  ;;  %1306 = vlog2.f32 %v831_v59 }
 0x307   :  { %v1297_v16 = vpop.eup %1296  ;;  %v944_v42 = vsub.f32 %v1669_v55, %v891_v29 }
 0x308   :  { %v1299_v60 = vpop.eup %1298  ;;  %971 = vst [vmem:[%s1897_s5 + $0x28] sm:$0xff] %v939_v39  ;;  %v893_v37 = vmul.f32 0.6931472, %v1297_v16  ;;  %v833_v18 = vpop.xlane.xlu1 %832 }
 0x309   :  { %976 = vst [vmem:[%s1897_s5 + $0x50] sm:$0xff] %v944_v42  ;;  %v887_v19 = vmul.f32 0.6931472, %v1299_v60  ;;  %1308 = vlog2.f32 %v833_v18  ;;  %v843_v62 = vpop.xlane.xlu0 %842 }
 0x30a   :  { %v945_v48 = vsub.f32 %v1672_v58, %v893_v37  ;;  %1310 = vlog2.f32 %v843_v62 }
 0x30b   :  { %v1301_v45 = vpop.eup %1300  ;;  %v942_v55 = vsub.f32 %v1677_v0, %v887_v19 }
 0x30c   :  { %v1303_v1 = vpop.eup %1302  ;;  %977 = vst [vmem:[%s1897_s5 + $0x58] sm:$0xff] %v945_v48  ;;  %v889_v21 = vmul.f32 0.6931472, %v1301_v45  ;;  %v845_v24 = vpop.xlane.xlu1 %844 }
 0x30d   :  { %974 = vst [vmem:[%s1897_s5 + $0x40] sm:$0xff] %v942_v55  ;;  %v899_v50 = vmul.f32 0.6931472, %v1303_v1  ;;  %1312 = vlog2.f32 %v845_v24  ;;  %v839_v3 = vpop.xlane.xlu0 %838 }
 0x30e   :  { %v943_v58 = vsub.f32 %v1680_v5, %v889_v21  ;;  %1314 = vlog2.f32 %v839_v3 }
 0x30f   :  { %v1305_v56 = vpop.eup %1304  ;;  %v948_v0 = vsub.f32 %v1685_v15, %v899_v50 }
 0x310   :  { %v1307_v49 = vpop.eup %1306  ;;  %975 = vst [vmem:[%s1897_s5 + $0x48] sm:$0xff] %v943_v58  ;;  %v901_v28 = vmul.f32 0.6931472, %v1305_v56  ;;  %v841_v61 = vpop.xlane.xlu1 %840 }
 0x311   :  { %980 = vst [vmem:[%s1897_s5 + $0x70] sm:$0xff] %v948_v0  ;;  %v895_v63 = vmul.f32 0.6931472, %v1307_v49  ;;  %1316 = vlog2.f32 %v841_v61  ;;  %v851_v26 = vpop.xlane.xlu0 %850 }
 0x312   :  { %v949_v5 = vsub.f32 %v1688_v22, %v901_v28  ;;  %1318 = vlog2.f32 %v851_v26 }
 0x313   :  { %v1309_v7 = vpop.eup %1308  ;;  %v946_v15 = vsub.f32 %v1693_v14, %v895_v63 }
 0x314   :  { %v1311_v30 = vpop.eup %1310  ;;  %981 = vst [vmem:[%s1897_s5 + $0x78] sm:$0xff] %v949_v5  ;;  %v897_v52 = vmul.f32 0.6931472, %v1309_v7  ;;  %v853_v12 = vpop.xlane.xlu1 %852 }
 0x315   :  { %978 = vst [vmem:[%s1897_s5 + $0x60] sm:$0xff] %v946_v15  ;;  %v907_v33 = vmul.f32 0.6931472, %v1311_v30  ;;  %1320 = vlog2.f32 %v853_v12  ;;  %v847_v20 = vpop.xlane.xlu0 %846 }
 0x316   :  { %v947_v22 = vsub.f32 %v1696_v32, %v897_v52  ;;  %1322 = vlog2.f32 %v847_v20 }
 0x317   :  { %v1313_v10 = vpop.eup %1312  ;;  %v952_v14 = vsub.f32 %v1701_v40, %v907_v33 }
 0x318   :  { %v1315_v9 = vpop.eup %1314  ;;  %979 = vst [vmem:[%s1897_s5 + $0x68] sm:$0xff] %v947_v22  ;;  %v909_v54 = vmul.f32 0.6931472, %v1313_v10  ;;  %v849_v11 = vpop.xlane.xlu1 %848 }
 0x319   :  { %984 = vst [vmem:[%s1897_s5 + $0x90] sm:$0xff] %v952_v14  ;;  %v903_v17 = vmul.f32 0.6931472, %v1315_v9  ;;  %1324 = vlog2.f32 %v849_v11  ;;  %v859_v31 = vpop.xlane.xlu0 %858 }
 0x31a   :  { %v953_v32 = vsub.f32 %v1704_v47, %v909_v54  ;;  %1326 = vlog2.f32 %v859_v31 }
 0x31b   :  { %v1317_v57 = vpop.eup %1316  ;;  %v950_v40 = vsub.f32 %v1709_v53, %v903_v17 }
 0x31c   :  { %v1319_v34 = vpop.eup %1318  ;;  %985 = vst [vmem:[%s1897_s5 + $0x98] sm:$0xff] %v953_v32  ;;  %v905_v23 = vmul.f32 0.6931472, %v1317_v57  ;;  %v861_v13 = vpop.xlane.xlu1 %860 }
 0x31d   :  { %982 = vst [vmem:[%s1897_s5 + $0x80] sm:$0xff] %v950_v40  ;;  %v915_v25 = vmul.f32 0.6931472, %v1319_v34  ;;  %1328 = vlog2.f32 %v861_v13  ;;  %v855_v29 = vpop.xlane.xlu0 %854 }
 0x31e   :  { %v951_v47 = vsub.f32 %v1712_v27, %v905_v23  ;;  %1330 = vlog2.f32 %v855_v29 }
 0x31f   :  { %v1321_v59 = vpop.eup %1320  ;;  %v956_v53 = vsub.f32 %v1717_v2, %v915_v25 }
 0x320   :  { %v1323_v39 = vpop.eup %1322  ;;  %983 = vst [vmem:[%s1897_s5 + $0x88] sm:$0xff] %v951_v47  ;;  %v917_v16 = vmul.f32 0.6931472, %v1321_v59  ;;  %v857_v42 = vpop.xlane.xlu1 %856 }
 0x321   :  { %988 = vst [vmem:[%s1897_s5 + $0xb0] sm:$0xff] %v956_v53  ;;  %v911_v60 = vmul.f32 0.6931472, %v1323_v39  ;;  %1332 = vlog2.f32 %v857_v42  ;;  %v863_v37 = vpop.xlane.xlu0 %862 }
 0x322   :  { %v957_v27 = vsub.f32 %v1720_v6, %v917_v16  ;;  %1334 = vlog2.f32 %v863_v37 }
 0x323   :  { %v1325_v18 = vpop.eup %1324  ;;  %v954_v2 = vsub.f32 %v1725_v35, %v911_v60 }
 0x324   :  { %v1327_v19 = vpop.eup %1326  ;;  %989 = vst [vmem:[%s1897_s5 + $0xb8] sm:$0xff] %v957_v27  ;;  %v913_v62 = vmul.f32 0.6931472, %v1325_v18  ;;  %v865_v48 = vpop.xlane.xlu1 %864 }
 0x325   :  { %986 = vst [vmem:[%s1897_s5 + $0xa0] sm:$0xff] %v954_v2  ;;  %v923_v45 = vmul.f32 0.6931472, %v1327_v19  ;;  %1336 = vlog2.f32 %v865_v48  ;;  %v867_v55 = vpop.xlane.xlu0 %866 }
 0x326   :  { %v955_v6 = vsub.f32 %v1728_v36, %v913_v62  ;;  %1338 = vlog2.f32 %v867_v55 }
 0x327   :  { %v1329_v1 = vpop.eup %1328  ;;  %v960_v35 = vsub.f32 %v1733_v38, %v923_v45 }
 0x328   :  { %v1331_v21 = vpop.eup %1330  ;;  %987 = vst [vmem:[%s1897_s5 + $0xa8] sm:$0xff] %v955_v6  ;;  %v925_v24 = vmul.f32 0.6931472, %v1329_v1  ;;  %v869_v50 = vpop.xlane.xlu1 %868 }
 0x329   :  { %992 = vst [vmem:[%s1897_s5 + $0xd0] sm:$0xff] %v960_v35  ;;  %v919_v3 = vmul.f32 0.6931472, %v1331_v21  ;;  %1340 = vlog2.f32 %v869_v50 }
 0x32a   :  { %v961_v58 = vsub.f32 %v1736_v41, %v925_v24 }
 0x32b   :  { %v1333_v36 = vpop.eup %1332  ;;  %v958_v56 = vsub.f32 %v1741_v43, %v919_v3 }
 0x32c   :  { %v1335_v0 = vpop.eup %1334  ;;  %993 = vst [vmem:[%s1897_s5 + $0xd8] sm:$0xff] %v961_v58  ;;  %v921_v38 = vmul.f32 0.6931472, %v1333_v36 }
 0x32d   :  { %990 = vst [vmem:[%s1897_s5 + $0xc0] sm:$0xff] %v958_v56  ;;  %v927_v49 = vmul.f32 0.6931472, %v1335_v0 }
 0x32e   :  { %v959_v28 = vsub.f32 %v1744_v44, %v921_v38 }
 0x32f   :  { %v1337_v61 = vpop.eup %1336  ;;  %v962_v63 = vsub.f32 %v1749_v46, %v927_v49 }
 0x330   :  { %v1339_v41 = vpop.eup %1338  ;;  %991 = vst [vmem:[%s1897_s5 + $0xc8] sm:$0xff] %v959_v28  ;;  %v929_v43 = vmul.f32 0.6931472, %v1337_v61 }
 0x331   :  { %994 = vst [vmem:[%s1897_s5 + $0xe0] sm:$0xff] %v962_v63  ;;  %v931_v26 = vmul.f32 0.6931472, %v1339_v41 }
 0x332   :  { %v963_v5 = vsub.f32 %v1753_v4, %v929_v43 }
 0x333   :  { %v1341_v7 = vpop.eup %1340  ;;  %v964_v15 = vsub.f32 %v1757_v51, %v931_v26 }
 0x334   :  { %995 = vst [vmem:[%s1897_s5 + $0xe8] sm:$0xff] %v963_v5  ;;  %v933_v44 = vmul.f32 0.6931472, %v1341_v7 }
 0x335   :  { %996 = vst [vmem:[%s1897_s5 + $0xf0] sm:$0xff] %v964_v15 }
 0x336   :  { %v965_v46 = vsub.f32 %v1761_v8, %v933_v44 }
 0x338   :  { %997 = vst [vmem:[%s1897_s5 + $0xf8] sm:$0xff] %v965_v46 }

</bundles_post_ra>
